<compile_context>
chip_gen: v7x
topology: tpu7x:2x2x1
jax: 0.10.0
libtpu: 0.0.40
codegen_flags: <defaults>
</compile_context>

<pallas_src>
import functools

import jax
import jax.numpy as jnp
from jax.experimental import pallas as pl
from jax.experimental.pallas import tpu as pltpu


def _tversky_sums_kernel(logits_ref, labels_ref, out_ref,
                         inter_acc, sump_acc, cnt_acc, *, binary):
    """Accumulates per-class [intersection, sum_p, count] for one batch element.

    fps / fns are derived outside the kernel:
        fps_c = sum_p_c - inter_c        fns_c = count_c - inter_c
    """
    t = pl.program_id(1)

    @pl.when(t == 0)
    def _():
        inter_acc[...] = jnp.zeros_like(inter_acc)
        sump_acc[...] = jnp.zeros_like(sump_acc)
        cnt_acc[...] = jnp.zeros_like(cnt_acc)

    x = logits_ref[...].astype(jnp.float32)              # (Cb, TN)
    lbl = labels_ref[...]                                 # (1, TN) int32

    if binary:
        # probas = [sigmoid(x), 1 - sigmoid(x)]
        # class 0 <-> label == 1, class 1 <-> label == 0 (matches torch.cat([s, f]))
        p_pos = 1.0 / (1.0 + jnp.exp(-x))                 # (1, TN)   (EUP)
        p = jnp.concatenate([p_pos, 1.0 - p_pos], axis=0)  # (2, TN)
        cls = jax.lax.broadcasted_iota(jnp.int32, p.shape, 0)
        mask = (1 - lbl) == cls                            # (2, TN) bool
    else:
        # channel softmax (classes on sublanes)
        m = jnp.max(x, axis=0, keepdims=True)              # (1, TN)   (XLU)
        e = jnp.exp(x - m)                                 # (Cb, TN)  (EUP)
        inv = pl.reciprocal(jnp.sum(e, axis=0, keepdims=True), approx=False)
        p = e * inv                                        # (Cb, TN)
        cls = jax.lax.broadcasted_iota(jnp.int32, p.shape, 0)
        mask = lbl == cls                                  # (Cb, TN) bool

    inter_acc[...] += jnp.sum(jnp.where(mask, p, 0.0), axis=1, keepdims=True)
    sump_acc[...] += jnp.sum(p, axis=1, keepdims=True)
    cnt_acc[...] += jnp.sum(jnp.where(mask, 1.0, 0.0), axis=1, keepdims=True)

    @pl.when(t == pl.num_programs(1) - 1)
    def _():
        out_ref[...] = jnp.concatenate(
            [inter_acc[...], sump_acc[...], cnt_acc[...]], axis=1)   # (C_eff, 3)


def _choose_tn(n, c_eff):
    """Largest lane tile (multiple of 128 dividing N) under a VMEM-safe budget.

    Budget: ~1 MiB of f32 per (C_eff, TN) logits block (double-buffered plus a
    few in-kernel temporaries of the same size stays well under the 32 MiB
    scoped-VMEM limit), and a hard cap of 65536 lanes.
    """
    if n % 128 != 0:
        return n                     # full-extent block is always legal
    budget_lanes = max(128, ((1 << 20) // (4 * max(c_eff, 1))) // 128 * 128)
    tn = min(65536, budget_lanes, n)
    tn -= tn % 128
    while n % tn:
        tn -= 128
    return tn


def _per_class_sums(logits_bcn, labels_b1n, binary):
    """logits_bcn: (B, Cb, N), labels_b1n: (B, 1, N) i32 -> (B, C_eff, 3) f32."""
    B, Cb, N = logits_bcn.shape
    C_eff = 2 if binary else Cb
    TN = _choose_tn(N, C_eff)
    n_tiles = N // TN

    kernel = functools.partial(_tversky_sums_kernel, binary=binary)
    return pl.pallas_call(
        kernel,
        out_shape=jax.ShapeDtypeStruct((B, C_eff, 3), jnp.float32),
        grid=(B, n_tiles),
        in_specs=[
            pl.BlockSpec((None, Cb, TN), lambda b, t: (b, 0, t)),   # logits tile
            pl.BlockSpec((None, 1, TN), lambda b, t: (b, 0, t)),    # labels tile
        ],
        out_specs=pl.BlockSpec((None, C_eff, 3), lambda b, t: (b, 0, 0)),
        scratch_shapes=[pltpu.VMEM((C_eff, 1), jnp.float32)] * 3,
        compiler_params=pltpu.CompilerParams(
            dimension_semantics=("parallel", "arbitrary"),
            vmem_limit_bytes=32 * 1024 * 1024),
    )(logits_bcn, labels_b1n)


def tversky_loss_pallas(logits, true, alpha, beta, eps=1e-7):
    """Matches Tversky_loss.forward(logits, true) for true of shape [B, 1, H, W]."""
    B, C, H, W = logits.shape
    N = H * W

    if true.ndim == 4:
        labels = true[:, 0]
    else:
        # TODO(synk): for 3-D `true` the PyTorch code reduces over dims (0, 2)
        # only (a likely upstream bug); we treat 3-D `true` the same as 4-D.
        labels = true
    labels_b1n = labels.reshape(B, 1, N).astype(jnp.int32)

    binary = (C == 1)
    logits_bcn = logits.reshape(B, C, N)

    partials = _per_class_sums(logits_bcn, labels_b1n, binary)   # (B, C_eff, 3)
    sums = jnp.sum(partials, axis=0)                              # (C_eff, 3)

    inter = sums[:, 0]
    fps = sums[:, 1] - inter          # sum(p) - inter
    fns = sums[:, 2] - inter          # count  - inter
    denom = inter + alpha * fps + beta * fns
    tversky = jnp.mean(inter / (denom + eps))
    return (1.0 - tversky).astype(jnp.float32)


class TverskyLossPallas:
    """Mirror of the PyTorch nn.Module interface."""

    def __init__(self, alpha, beta, eps=1e-7):
        self.alpha = alpha
        self.beta = beta
        self.eps = eps

    def __call__(self, logits, true):
        return tversky_loss_pallas(logits, true, self.alpha, self.beta, self.eps)


def tversky_loss_ref(logits, true, alpha, beta, eps=1e-7):
    """Pure-JAX transcription of the PyTorch forward (for verification)."""
    C = logits.shape[1]
    t = true[:, 0]                                                # squeeze(1) -> (B, H, W)
    if C == 1:
        oh = jax.nn.one_hot(t, 2, dtype=jnp.float32)              # (B, H, W, 2)
        oh = jnp.transpose(oh, (0, 3, 1, 2))
        oh = jnp.concatenate([oh[:, 1:2], oh[:, 0:1]], axis=1)
        pos = jax.nn.sigmoid(logits.astype(jnp.float32))
        probas = jnp.concatenate([pos, 1.0 - pos], axis=1)
    else:
        oh = jnp.transpose(jax.nn.one_hot(t, C, dtype=jnp.float32), (0, 3, 1, 2))
        probas = jax.nn.softmax(logits.astype(jnp.float32), axis=1)
    dims = (0, 2, 3)                                              # 4-D true -> (0,) + (2, 3)
    inter = jnp.sum(probas * oh, dims)
    fps = jnp.sum(probas * (1.0 - oh), dims)
    fns = jnp.sum((1.0 - probas) * oh, dims)
    denom = inter + alpha * fps + beta * fns
    return 1.0 - jnp.mean(inter / (denom + eps))


if __name__ == "__main__":
    key = jax.random.PRNGKey(0)
    k1, k2, k3, k4 = jax.random.split(key, 4)

    alpha, beta = 0.7, 0.3
    loss_fn = TverskyLossPallas(alpha, beta)

    # multi-class branch
    B, C, H, W = 2, 4, 16, 16
    logits = jax.random.normal(k1, (B, C, H, W), dtype=jnp.float32)
    true = jax.random.randint(k2, (B, 1, H, W), 0, C, dtype=jnp.int32)
    loss = jax.block_until_ready(loss_fn(logits, true))
    ref = jax.block_until_ready(tversky_loss_ref(logits, true, alpha, beta))
    assert jnp.allclose(loss, ref, atol=1e-5, rtol=1e-5), (loss, ref)

    # binary (C == 1) branch
    logits1 = jax.random.normal(k3, (B, 1, H, W), dtype=jnp.float32)
    true1 = jax.random.randint(k4, (B, 1, H, W), 0, 2, dtype=jnp.int32)
    loss1 = jax.block_until_ready(loss_fn(logits1, true1))
    ref1 = jax.block_until_ready(tversky_loss_ref(logits1, true1, alpha, beta))
    assert jnp.allclose(loss1, ref1, atol=1e-5, rtol=1e-5), (loss1, ref1)

    print("KERNEL_OK")
</pallas_src>

<mosaic_0001>
module attributes {stable_mosaic.version = 11 : i64} {
  func.func @_tversky_sums_kernel(%arg0: i32, %arg1: i32, %arg2: memref<1x4x256xf32, #tpu.memory_space<vmem>>, %arg3: memref<1x1x256xi32, #tpu.memory_space<vmem>>, %arg4: memref<1x4x3xf32, #tpu.memory_space<vmem>>, %arg5: memref<4x1xf32, #tpu.memory_space<vmem>>, %arg6: memref<4x1xf32, #tpu.memory_space<vmem>>, %arg7: memref<4x1xf32, #tpu.memory_space<vmem>>) attributes {dimension_semantics = [#tpu.dimension_semantics<parallel>, #tpu.dimension_semantics<arbitrary>], iteration_bounds = array<i64: 2, 1>, scalar_prefetch = 0 : i64, scratch_operands = 3 : i64, tpu.core_type = #tpu.core_type<tc>, window_params = [{transform_indices = @transform_0, window_bounds = array<i64: 1, 4, 256>}, {transform_indices = @transform_1, window_bounds = array<i64: 1, 1, 256>}, {transform_indices = @transform_2, window_bounds = array<i64: 1, 4, 3>}]} {
    %c0_i32 = arith.constant 0 : i32
    %0 = arith.cmpi eq, %arg1, %c0_i32 : i32
    %1 = arith.extui %0 : i1 to i32
    %c0_i32_0 = arith.constant 0 : i32
    %2 = arith.cmpi ne, %1, %c0_i32_0 : i32
    scf.if %2 {
      %cst_27 = arith.constant 0.000000e+00 : f32
      %43 = vector.broadcast %cst_27 : f32 to vector<4x1xf32>
      %c0_28 = arith.constant 0 : index
      %c0_29 = arith.constant 0 : index
      %44 = vector.load %arg5[%c0_28, %c0_29] : memref<4x1xf32, #tpu.memory_space<vmem>>, vector<4x1xf32>
      tpu.vector_store %arg5[%c0_28, %c0_29], %43 {strides = array<i32>} : memref<4x1xf32, #tpu.memory_space<vmem>>, vector<4x1xf32>,
      %cst_30 = arith.constant 0.000000e+00 : f32
      %45 = vector.broadcast %cst_30 : f32 to vector<4x1xf32>
      %c0_31 = arith.constant 0 : index
      %c0_32 = arith.constant 0 : index
      %46 = vector.load %arg6[%c0_31, %c0_32] : memref<4x1xf32, #tpu.memory_space<vmem>>, vector<4x1xf32>
      tpu.vector_store %arg6[%c0_31, %c0_32], %45 {strides = array<i32>} : memref<4x1xf32, #tpu.memory_space<vmem>>, vector<4x1xf32>,
      %cst_33 = arith.constant 0.000000e+00 : f32
      %47 = vector.broadcast %cst_33 : f32 to vector<4x1xf32>
      %c0_34 = arith.constant 0 : index
      %c0_35 = arith.constant 0 : index
      %48 = vector.load %arg7[%c0_34, %c0_35] : memref<4x1xf32, #tpu.memory_space<vmem>>, vector<4x1xf32>
      tpu.vector_store %arg7[%c0_34, %c0_35], %47 {strides = array<i32>} : memref<4x1xf32, #tpu.memory_space<vmem>>, vector<4x1xf32>,
    } else {
    }
    %c0 = arith.constant 0 : index
    %c0_1 = arith.constant 0 : index
    %c0_2 = arith.constant 0 : index
    %3 = vector.load %arg2[%c0, %c0_1, %c0_2] : memref<1x4x256xf32, #tpu.memory_space<vmem>>, vector<1x4x256xf32>
    %4 = vector.shape_cast %3 : vector<1x4x256xf32> to vector<4x256xf32>
    %c0_3 = arith.constant 0 : index
    %c0_4 = arith.constant 0 : index
    %c0_5 = arith.constant 0 : index
    %5 = vector.load %arg3[%c0_3, %c0_4, %c0_5] : memref<1x1x256xi32, #tpu.memory_space<vmem>>, vector<1x1x256xi32>
    %6 = vector.shape_cast %5 : vector<1x1x256xi32> to vector<1x256xi32>
    %cst = arith.constant dense<0xFF800000> : vector<256xf32>
    %7 = vector.multi_reduction <maximumf>, %4, %cst [0] : vector<4x256xf32> to vector<256xf32>
    %8 = vector.shape_cast %7 : vector<256xf32> to vector<1x256xf32>
    %9 = vector.broadcast %8 : vector<1x256xf32> to vector<4x256xf32>
    %10 = arith.subf %4, %9 : vector<4x256xf32>
    %11 = math.exp %10 : vector<4x256xf32>
    %cst_6 = arith.constant dense<0.000000e+00> : vector<256xf32>
    %12 = vector.multi_reduction <add>, %11, %cst_6 [0] : vector<4x256xf32> to vector<256xf32>
    %13 = vector.shape_cast %12 : vector<256xf32> to vector<1x256xf32>
    %14 = tpu.reciprocal %13 : vector<1x256xf32> -> vector<1x256xf32>
    %15 = vector.broadcast %14 : vector<1x256xf32> to vector<4x256xf32>
    %16 = arith.mulf %11, %15 : vector<4x256xf32>
    %17 = tpu.iota {dimensions = array<i32: 0>} : vector<4x256xi32>
    %18 = vector.broadcast %6 : vector<1x256xi32> to vector<4x256xi32>
    %19 = arith.cmpi eq, %18, %17 : vector<4x256xi32>
    %c0_7 = arith.constant 0 : index
    %c0_8 = arith.constant 0 : index
    %20 = vector.load %arg5[%c0_7, %c0_8] : memref<4x1xf32, #tpu.memory_space<vmem>>, vector<4x1xf32>
    %cst_9 = arith.constant 0.000000e+00 : f32
    %21 = vector.broadcast %cst_9 : f32 to vector<4x256xf32>
    %22 = arith.select %19, %16, %21 : vector<4x256xi1>, vector<4x256xf32>
    %cst_10 = arith.constant dense<0.000000e+00> : vector<4xf32>
    %23 = vector.multi_reduction <add>, %22, %cst_10 [1] : vector<4x256xf32> to vector<4xf32>
    %24 = vector.shape_cast %23 : vector<4xf32> to vector<4x1xf32>
    %25 = arith.addf %20, %24 : vector<4x1xf32>
    %c0_11 = arith.constant 0 : index
    %c0_12 = arith.constant 0 : index
    %26 = vector.load %arg5[%c0_11, %c0_12] : memref<4x1xf32, #tpu.memory_space<vmem>>, vector<4x1xf32>
    tpu.vector_store %arg5[%c0_11, %c0_12], %25 {strides = array<i32>} : memref<4x1xf32, #tpu.memory_space<vmem>>, vector<4x1xf32>,
    %c0_13 = arith.constant 0 : index
    %c0_14 = arith.constant 0 : index
    %27 = vector.load %arg6[%c0_13, %c0_14] : memref<4x1xf32, #tpu.memory_space<vmem>>, vector<4x1xf32>
    %cst_15 = arith.constant dense<0.000000e+00> : vector<4xf32>
    %28 = vector.multi_reduction <add>, %16, %cst_15 [1] : vector<4x256xf32> to vector<4xf32>
    %29 = vector.shape_cast %28 : vector<4xf32> to vector<4x1xf32>
    %30 = arith.addf %27, %29 : vector<4x1xf32>
    %c0_16 = arith.constant 0 : index
    %c0_17 = arith.constant 0 : index
    %31 = vector.load %arg6[%c0_16, %c0_17] : memref<4x1xf32, #tpu.memory_space<vmem>>, vector<4x1xf32>
    tpu.vector_store %arg6[%c0_16, %c0_17], %30 {strides = array<i32>} : memref<4x1xf32, #tpu.memory_space<vmem>>, vector<4x1xf32>,
    %c0_18 = arith.constant 0 : index
    %c0_19 = arith.constant 0 : index
    %32 = vector.load %arg7[%c0_18, %c0_19] : memref<4x1xf32, #tpu.memory_space<vmem>>, vector<4x1xf32>
    %cst_20 = arith.constant 1.000000e+00 : f32
    %cst_21 = arith.constant 0.000000e+00 : f32
    %33 = vector.broadcast %cst_20 : f32 to vector<4x256xf32>
    %34 = vector.broadcast %cst_21 : f32 to vector<4x256xf32>
    %35 = arith.select %19, %33, %34 : vector<4x256xi1>, vector<4x256xf32>
    %cst_22 = arith.constant dense<0.000000e+00> : vector<4xf32>
    %36 = vector.multi_reduction <add>, %35, %cst_22 [1] : vector<4x256xf32> to vector<4xf32>
    %37 = vector.shape_cast %36 : vector<4xf32> to vector<4x1xf32>
    %38 = arith.addf %32, %37 : vector<4x1xf32>
    %c0_23 = arith.constant 0 : index
    %c0_24 = arith.constant 0 : index
    %39 = vector.load %arg7[%c0_23, %c0_24] : memref<4x1xf32, #tpu.memory_space<vmem>>, vector<4x1xf32>
    tpu.vector_store %arg7[%c0_23, %c0_24], %38 {strides = array<i32>} : memref<4x1xf32, #tpu.memory_space<vmem>>, vector<4x1xf32>,
    %c0_i32_25 = arith.constant 0 : i32
    %40 = arith.cmpi eq, %arg1, %c0_i32_25 : i32
    %41 = arith.extui %40 : i1 to i32
    %c0_i32_26 = arith.constant 0 : i32
    %42 = arith.cmpi ne, %41, %c0_i32_26 : i32
    scf.if %42 {
      %c0_27 = arith.constant 0 : index
      %c0_28 = arith.constant 0 : index
      %43 = vector.load %arg5[%c0_27, %c0_28] : memref<4x1xf32, #tpu.memory_space<vmem>>, vector<4x1xf32>
      %c0_29 = arith.constant 0 : index
      %c0_30 = arith.constant 0 : index
      %44 = vector.load %arg6[%c0_29, %c0_30] : memref<4x1xf32, #tpu.memory_space<vmem>>, vector<4x1xf32>
      %c0_31 = arith.constant 0 : index
      %c0_32 = arith.constant 0 : index
      %45 = vector.load %arg7[%c0_31, %c0_32] : memref<4x1xf32, #tpu.memory_space<vmem>>, vector<4x1xf32>
      %46 = tpu.concatenate %43, %44, %45 in 1 : vector<4x1xf32>, vector<4x1xf32>, vector<4x1xf32> -> vector<4x3xf32>
      %c0_33 = arith.constant 0 : index
      %c0_34 = arith.constant 0 : index
      %c0_35 = arith.constant 0 : index
      %47 = vector.load %arg4[%c0_33, %c0_34, %c0_35] : memref<1x4x3xf32, #tpu.memory_space<vmem>>, vector<1x4x3xf32>
      %48 = vector.shape_cast %47 : vector<1x4x3xf32> to vector<4x3xf32>
      %49 = vector.shape_cast %46 : vector<4x3xf32> to vector<1x4x3xf32>
      tpu.vector_store %arg4[%c0_33, %c0_34, %c0_35], %49 {strides = array<i32>} : memref<1x4x3xf32, #tpu.memory_space<vmem>>, vector<1x4x3xf32>,
    } else {
    }
    return
  }
  func.func @transform_0(%arg0: i32, %arg1: i32) -> (i32, i32, i32) {
    %c0_i32 = arith.constant 0 : i32
    %c0_i32_0 = arith.constant 0 : i32
    return %arg0, %c0_i32, %arg1 : i32, i32, i32
  }
  func.func @transform_1(%arg0: i32, %arg1: i32) -> (i32, i32, i32) {
    %c0_i32 = arith.constant 0 : i32
    %c0_i32_0 = arith.constant 0 : i32
    return %arg0, %c0_i32, %arg1 : i32, i32, i32
  }
  func.func @transform_2(%arg0: i32, %arg1: i32) -> (i32, i32, i32) {
    %c0_i32 = arith.constant 0 : i32
    %c0_i32_0 = arith.constant 0 : i32
    %c0_i32_1 = arith.constant 0 : i32
    return %arg0, %c0_i32, %c0_i32_0 : i32, i32, i32
  }
}

</mosaic_0001>

<bundles_post_ra>
// kernel: tpu_custom_call.1
= control target key start
LH: loop header
LB: loop body
LE: loop exit
PB: predicated region body
PF: predicated region fallthrough
CT: control target
= control target key end

     0   :  { %7 = vsyncpa [#allocation6], 0  ;;  %s854_s0 = inlined_call_operand.hbm [shape: f32[2,4,256], index: 0, kind: input, shape index: {}]   ;;  %s855_s1 = inlined_call_operand.hbm [shape: s32[2,1,256], index: 1, kind: input, shape index: {}]   ;;  %s856_s2 = inlined_call_operand.vmem [shape: f32[2,4,3], index: 2, kind: output, shape index: {}]  }
   0x1   :  { %9 = vsyncpa [#allocation6 + $0x1], 0 }
   0x2   :  { %10 = vsyncpa [#allocation8], 0 }
   0x3   :  { %12 = vsyncpa [#allocation8 + $0x1], 0  ;;  %s669_s9 = smov 0   ;;  %s671_s10 = smov 0  }
   0x4   :  { %s673_s11 = smov 0   ;;  %s675_s12 = smov 0  }
   0x5   :  { %s677_s13 = smov 0   ;;  %s679_s14 = smov 0  }
   0x6 LB: > { %s445_s15 = sadd.s32 4294967295, %s647_s14   ;;  %s30_s16 = sadd.s32 1, %s643_s13  ;;  %s647_s14 = sphi %s679_s14, %s18_s14   ;;  %s643_s13 = sphi %s677_s13, %s870_s13   ;;  %s639_s12 = sphi %s675_s12, %s869_s12   ;;  %s635_s11 = sphi %s673_s11, %s868_s11   ;;  %s631_s10 = sphi %s671_s10, %s867_s10   ;;  %s627_s9 = sphi %s669_s9, %s866_s9  }
   0x7   : > { %p32_p0 = scmp.ge.s32.totalorder %s30_s16, 2  ;;  %s39_s17 = sadd.s32 1, %s635_s11 }
   0x8   : > { %p46_p1 = scmp.ne.s32.totalorder %s635_s11, %s631_s10  ;;  %p47_p2 = scmp.eq.s32.totalorder %s647_s14, 0 }
   0x9   : > { %s872_s16 = smov (%p32_p0, %s30_s16), 0  ;;  %p52_p4 = scmp.ne.s32.totalorder %s631_s10, %s627_s9 }
   0xa   : > { %p705_p3 = por %p47_p2, %p46_p1  ;;  %s34_s19 = ssub.s32 %s643_s13, %s872_s16 }
   0xb   : > { %p53_p5 = scmp.eq.s32.totalorder %s445_s15, 0  ;;  %p37_p6 = scmp.eq.s32.totalorder %s34_s19, 0 }
   0xc   : > { %p474_p8 = scmp.lt.s32.totalorder %s647_s14, 2  ;;  %s721_s22 = sand.u32 1, %s635_s11  }
   0xd   : > { %p712_p7 = por %p53_p5, %p52_p4  ;;  %s461_s23 = sshll.u32 %s643_s13, 7 }
   0xe   : > { %s718_s21 = scalar_select %p37_p6, %s635_s11, %s39_s17  }
   0xf   : > { %s859_s20 = scalar_select %p712_p7, 1, 0 }
  0x10   : > { %s449_s24 = sshll.u32 %s721_s22, 3  ;;  %s728_s27 = scalar_lea.hbm %s854_s0, %s461_s23 }
  0x11   : > { %s134_s28 = scalar_lea.vmem [#allocation5], %s449_s24  ;;  %p732_p9 = pnand %p474_p8, %p705_p3 }
  0x12   : > { %s144_s29 = sshll.u32 %s134_s28, 4  ;;  %s131_s3 = scalar_lea.sflag [#allocation6], %s721_s22  ;;  %s736_s29 = int_to_ptr.vmem [resolvable:$true] %s144_s29 }
  0x13   : > { %s533_s4 = scalar_lea.hbm %s728_s27, 128  ;;  %p535_p13 = pneg %p732_p9 }
  0x14   : > { %p534_p12 = scmp.ne.s32.totalorder %s728_s27, %s533_s4  ;;  %s538_s7 = scalar_lea.hbm %s854_s0, 256 }
  0x15   : > { %p539_p2 = scmp.lt.u32.totalorder %s728_s27, %s854_s0  ;;  %p540_p3 = scmp.lt.u32.totalorder %s538_s7, %s533_s4 }
  0x16   : > { %p536_p0 = pnand %p535_p13, %p534_p12  ;;  %p542_p5 = scmp.lt.u32.totalorder %s533_s4, %s728_s27 }
  0x17   : > { %p541_p4 = por %p540_p3, %p539_p2 }
  0x18   : > { %p537_p1 = pneg %p536_p0 }
  0x19   : > { %p543_p6 = por %p542_p5, %p541_p4 }
  0x1b   : > { %p544_p8 = pnand %p543_p6, %p537_p1 }
  0x1d   : > { %547 = shalt.err (!%p544_p8)
}
  0x1e   : > { %s548_s15 = scalar_lea.vmem %s736_s29, 128  ;;  %s649_s17 = smov [#allocation5]  }
  0x1f   : > { %p549_p12 = scmp.ne.s32.totalorder %s736_s29, %s548_s15  ;;  %s553_s18 = sshll.u32 %s649_s17, 4  ;;  %s554_s18 = int_to_ptr.vmem [resolvable:$false] %s553_s18 }
  0x20   : > { %s555_s19 = scalar_lea.vmem %s554_s18, 256  ;;  %p556_p11 = scmp.lt.s32.totalorder %s736_s29, %s554_s18 }
  0x21   : > { %p551_p0 = pnand %p549_p12, %p535_p13  ;;  %p557_p2 = scmp.lt.s32.totalorder %s555_s19, %s548_s15 }
  0x23   : > { %p552_p10 = pneg %p551_p0  ;;  %p558_p3 = por %p557_p2, %p556_p11 }
  0x25   : > { %p559_p4 = pnand %p558_p3, %p552_p10 }
  0x27   : > { %562 = shalt.err (!%p559_p4)
}
  0x28   : > { %470 = dma.hbm_to_vmem [thread:$0]  (!%p732_p9), %s728_s27, 128, %s736_s29, %s131_s3  }
  0x29   : > { %p861_p1 = scmp.lt.s32.totalorder %s647_s14, 3  ;;  %p862_p5 = scmp.ge.s32.totalorder %s647_s14, 1 }
  0x2a   : > { %s452_s24 = sshll.u32 %s721_s22, 1  ;;  %s462_s25 = sshll.u32 %s643_s13, 5 }
  0x2b   : > { %p770_p6 = pnand %p862_p5, %p861_p1  ;;  %s779_s4 = scalar_lea.hbm %s855_s1, %s462_s25 }
  0x2c   : > { %s155_s5 = scalar_lea.vmem [#allocation7], %s452_s24  ;;  %s152_s27 = scalar_lea.sflag [#allocation8], %s721_s22 }
  0x2d   : > { %s863_s23 = scalar_select %p770_p6, 1, 0 }
  0x2e   : > { %s165_s6 = sshll.u32 %s155_s5, 4  ;;  %s563_s29 = scalar_lea.hbm %s779_s4, 32  ;;  %s166_s6 = int_to_ptr.vmem [resolvable:$true] %s165_s6 }
  0x2f   : > { %p564_p10 = scmp.ne.s32.totalorder %s779_s4, %s563_s29  ;;  %s568_s8 = scalar_lea.hbm %s855_s1, 64 }
  0x30   : > { %p569_p12 = scmp.lt.u32.totalorder %s779_s4, %s855_s1  ;;  %p570_p0 = scmp.lt.u32.totalorder %s568_s8, %s563_s29 }
  0x31   : > { %p566_p11 = pnand %p564_p10, %p535_p13  ;;  %p572_p3 = scmp.lt.u32.totalorder %s563_s29, %s779_s4 }
  0x32   : > { %p571_p2 = por %p570_p0, %p569_p12 }
  0x33   : > { %p567_p8 = pneg %p566_p11 }
  0x34   : > { %p573_p4 = por %p572_p3, %p571_p2 }
  0x36   : > { %p574_p1 = pnand %p573_p4, %p567_p8 }
  0x38   : > { %577 = shalt.err (!%p574_p1)
}
  0x39   : > { %s578_s22 = scalar_lea.vmem %s166_s6, 32  ;;  %s650_s17 = smov [#allocation7]  }
  0x3a   : > { %p579_p5 = scmp.ne.s32.totalorder %s166_s6, %s578_s22  ;;  %s583_s18 = sshll.u32 %s650_s17, 4  ;;  %s584_s18 = int_to_ptr.vmem [resolvable:$false] %s583_s18 }
  0x3b   : > { %s585_s19 = scalar_lea.vmem %s584_s18, 64  ;;  %p586_p7 = scmp.lt.s32.totalorder %s166_s6, %s584_s18 }
  0x3c   : > { %p581_p10 = pnand %p579_p5, %p535_p13  ;;  %p587_p6 = scmp.lt.s32.totalorder %s585_s19, %s578_s22 }
  0x3e   : > { %p582_p11 = pneg %p581_p10  ;;  %p588_p0 = por %p587_p6, %p586_p7 }
  0x40   : > { %p589_p12 = pnand %p588_p0, %p582_p11 }
  0x42   : > { %592 = shalt.err (!%p589_p12)
}
  0x43   : > { %473 = dma.hbm_to_vmem [thread:$0]  (!%p732_p9), %s779_s4, 32, %s166_s6, %s152_s27  }
  0x44   : > { %p864_p8 = scmp.ne.s32.totalorder %s863_s23, 0 }
  0x45   : > { %s176_s24 = sand.u32 (!%p864_p8), 1, %s631_s10   ;;  %p865_p13 = scmp.ne.s32.totalorder (!%p864_p8), %s859_s20, 0 }
  0x46   : > { %174 = sbr.rel (%p864_p8) target bundleno = 422 (0x1a6), region = 28  ;;  %s456_s25 = sshll.u32 (!%p864_p8), %s176_s24, 3 }
  0x47   : > { %s177_s26 = scalar_lea.sflag (!%p864_p8), [#allocation6], %s176_s24  ;;  %s180_s28 = scalar_lea.vmem (!%p864_p8), [#allocation5], %s456_s25 }
  0x4d   : > { %618 = dma.done.wait (%p865_p13), %s177_s26, 128  }
  0x4e   : > { %620 = vsyncadd (%p865_p13), %s177_s26, 4294967168  ;;  %s457_s5 = sshll.u32 %s176_s24, 1  ;;  %s186_s29 = scalar_lea.sflag [#allocation8], %s176_s24 }
  0x4f   : > { %s808_s30 = scalar_lea.vmem [#allocation7], %s457_s5 }
  0x50   : > { %622 = dma.done.wait (%p865_p13), %s186_s29, 32  }
  0x51   : > { %624 = vsyncadd (%p865_p13), %s186_s29, 4294967264  ;;  %vm224_vm0 = vcmask 3072   ;;  %v651_v0 = vmov 0.0   ;;  %vm233_vm1 = vcmask 1043456   ;;  %v228_v1 = vld [vmem:[%s180_s28] sm:$0xff]  ;;  %v279_v33 = vlaneseq  ;;  %s652_s20 = smov 1  }
  0x52   : > { %226 = vst.msk [vmem:[#allocation3] sm:$0xf] %vm224_vm0, %v651_v0  ;;  %225 = vst.msk [vmem:[#allocation2] sm:$0xf] %vm224_vm0, %v651_v0  ;;  %v231_v2 = vcombine.high %v228_v1, %v228_v1  ;;  %v234_v3 = vsel %vm233_vm1, %v228_v1, -inf  ;;  %s653_s23 = smov 2  }
  0x53   : > { %227 = vst.msk [vmem:[#allocation4] sm:$0xf] %vm224_vm0, %v651_v0  ;;  %v235_v4 = vrot.slane %v234_v3, 4  ;;  %v280_v37 = vshrl.u32 %v279_v33, 7  ;;  %v229_v40 = vld [vmem:[%s808_s30] sm:$0x3] }
  0x54   : > { %v241_v5 = vsel %vm233_vm1, %v231_v2, -inf  ;;  %p216_p7 = scmp.lt.s32.totalorder %s639_s12, 1  ;;  %vm337_vm4 = vcmask 7168   ;;  %vm339_vm5 = vcmask 15360   ;;  %vm341_vm6 = vcmask 19456  }
  0x55   : > { %v236_v6 = vmax.f32 %v234_v3, %v235_v4  ;;  %v242_v7 = vrot.slane %v241_v5, 4  ;;  %v283_v38 = vsub.s32 0, %v280_v37  ;;  %v287_v39 = vsub.s32 1, %v280_v37 }
  0x56   : > { %s874_s12 = smov (!%p216_p7, %s639_s12), 1 }
  0x57   : > { %v237_v8 = vrot.slane %v236_v6, 2  ;;  %v243_v9 = vmax.f32 %v241_v5, %v242_v7  ;;  %v284_v41 = vrot.slane %v229_v40, %v283_v38  ;;  %v288_v42 = vrot.slane %v229_v40, %v287_v39  ;;  %s458_s4 = sshll.u32 %s874_s12, 2 }
  0x58   : > { %s219_s3 = scalar_lea.vmem %s856_s2, %s458_s4 }
  0x59   : > { %v238_v10 = vmax.f32 %v236_v6, %v237_v8  ;;  %v244_v11 = vrot.slane %v243_v9, 2  ;;  %vm289_vm2 = vcmp.eq.s32.totalorder %v284_v41, %v280_v37  ;;  %vm290_vm3 = vcmp.eq.s32.totalorder %v288_v42, %v280_v37  ;;  %v305_v61 = vld [vmem:[#allocation3] sm:$0xf]  ;;  %v291_v62 = vld [vmem:[#allocation2] sm:$0xf] }
  0x5a   : > { %v314_v47 = vsel %vm289_vm2, 1.0, %v651_v0  ;;  %v315_v48 = vsel %vm290_vm3, 1.0, %v651_v0  ;;  %v313_v2 = vld [vmem:[#allocation4] sm:$0xf] }
  0x5b   : > { %v239_v12 = vrot.slane %v238_v10, 1  ;;  %v245_v13 = vmax.f32 %v243_v9, %v244_v11  ;;  %v316_v54 = vsel %vm233_vm1, %v314_v47, 0.0  ;;  %v317_v55 = vsel %vm233_vm1, %v315_v48, 0.0 }
  0x5c   : > { %v318_v60 = vadd.f32 %v317_v55, %v316_v54 }
  0x5d   : > { %v240_v14 = vmax.f32 %v238_v10, %v239_v12  ;;  %v246_v15 = vrot.slane %v245_v13, 1 }
  0x5f   : > { %v247_v16 = vmax.f32 %v245_v13, %v246_v15 }
  0x61   : > { %v250_v17 = vcombine.low %v240_v14, %v247_v16 }
  0x63   : > { %v252_v18 = vsub.f32 %v228_v1, %v250_v17 }
  0x65   : > { %v253_v19 = vmul.f32 1.442695, %v252_v18 }
  0x67   : > { %527 = vpow2.f32 %v253_v19 }
  0x71   : > { %v528_v20 = vpop.eup %527 }
  0x72   : > { %v256_v21 = vcombine.high %v528_v20, %v528_v20  ;;  %v258_v22 = vsel %vm233_vm1, %v528_v20, 0.0 }
  0x73   : > { %v259_v23 = vrot.slane %v258_v22, 4 }
  0x74   : > { %v265_v24 = vsel %vm233_vm1, %v256_v21, 0.0 }
  0x75   : > { %v260_v25 = vadd.f32 %v259_v23, %v258_v22  ;;  %v266_v26 = vrot.slane %v265_v24, 4 }
  0x77   : > { %v261_v27 = vrot.slane %v260_v25, 2  ;;  %v267_v28 = vadd.f32 %v266_v26, %v265_v24 }
  0x79   : > { %v262_v29 = vadd.f32 %v261_v27, %v260_v25  ;;  %v268_v30 = vrot.slane %v267_v28, 2 }
  0x7b   : > { %v263_v31 = vrot.slane %v262_v29, 1  ;;  %v269_v32 = vadd.f32 %v268_v30, %v267_v28 }
  0x7d   : > { %v264_v34 = vadd.f32 %v263_v31, %v262_v29  ;;  %v270_v35 = vrot.slane %v269_v32, 1 }
  0x7f   : > { %v271_v36 = vadd.f32 %v270_v35, %v269_v32  ;;  %529 = vrcp.f32 %v264_v34 }
  0x81   : > { %531 = vrcp.f32 %v271_v36 }
  0x89   : > { %v530_v43 = vpop.eup %529 }
  0x8b   : > { %v532_v44 = vpop.eup %531 }
  0x8c   : > { %v276_v45 = vcombine.low %v530_v43, %v532_v44 }
  0x8e   : > { %v278_v46 = vmul.f32 %v528_v20, %v276_v45 }
  0x90   : > { %v293_v49 = vcombine.high %v278_v46, %v278_v46  ;;  %v306_v50 = vsel %vm233_vm1, %v278_v46, 0.0  ;;  %v295_v51 = vsel %vm289_vm2, %v278_v46, 0.0 }
  0x91   : > { %v297_v52 = vsel %vm233_vm1, %v295_v51, 0.0 }
  0x92   : > { %v307_v53 = vsel %vm233_vm1, %v293_v49, 0.0  ;;  %v296_v56 = vsel %vm290_vm3, %v293_v49, 0.0 }
  0x93   : > { %v308_v57 = vadd.f32 %v307_v53, %v306_v50  ;;  %v298_v58 = vsel %vm233_vm1, %v296_v56, 0.0 }
  0x94   : > { %v299_v59 = vadd.f32 %v298_v58, %v297_v52 }
  0x95   : > { %309 = vadd.xlane.f32.xlu0 %v308_v57 }
  0x96   : > { %300 = vadd.xlane.f32.xlu1 %v299_v59 }
  0x99   : > { %319 = vadd.xlane.f32.xlu0 %v318_v60 }
 0x122   : > { %v310_v63 = vpop.xlane.xlu0 %309 }
 0x123   : > { %v311_v0 = vadd.f32 %v310_v63, %v305_v61  ;;  %v301_v1 = vpop.xlane.xlu1 %300 }
 0x124   : > { %v302_v3 = vadd.f32 %v301_v1, %v291_v62 }
 0x125   : > { %312 = vst.msk [vmem:[#allocation3] sm:$0xf] %vm224_vm0, %v311_v0 }
 0x126   : > { %v320_v4 = vpop.xlane.xlu0 %319  ;;  %304 = vst.msk [vmem:[#allocation2] sm:$0xf] %vm224_vm0, %v302_v3 }
 0x127   : > { %v321_v5 = vadd.f32 %v320_v4, %v313_v2 }
 0x129   : > { %322 = vst.msk [vmem:[#allocation4] sm:$0xf] %vm224_vm0, %v321_v5 }
 0x12c   : > { %v327_v6 = vld [vmem:[#allocation3] sm:$0xf] }
 0x12d   : > { %330 = vrot.lane.b32.xlu1 %v327_v6, %s652_s20  ;;  %v326_v9 = vld [vmem:[#allocation2] sm:$0xf] }
 0x130   : > { %v328_v7 = vld [vmem:[#allocation4] sm:$0xf] }
 0x131   : > { %334 = vrot.lane.b32.xlu0 %v328_v7, %s653_s23 }
 0x19f   : > { %v331_v8 = vpop.permute.xlu1 %330 }
 0x1a0   : > { %v338_v10 = vsel %vm337_vm4, %v326_v9, %v331_v8 }
 0x1a3   : > { %v335_v11 = vpop.permute.xlu0 %334 }
 0x1a4   : > { %v340_v12 = vsel %vm339_vm5, %v338_v10, %v335_v11 }
 0x1a5   : > { %342 = vst.msk [vmem:[%s219_s3] sm:$0xf] %vm341_vm6, %v340_v12 }
 0x1a6 PF: > { %s18_s14 = sadd.s32 1, %s647_s14   ;;  %s866_s9 = smov %s631_s10 }
 0x1a7   : > { %p15_p9 = scmp.ge.s32.totalorder %s18_s14, 4   ;;  %s867_s10 = smov %s635_s11 }
 0x1a8   : > { %s868_s11 = smov %s718_s21  ;;  %s869_s12 = smov %s643_s13 }
 0x1a9   : > { %s870_s13 = smov %s872_s16  ;;  %17 = sbr.rel (!%p15_p9) target bundleno = 6 (0x6), region = 89 }
 0x1b0   :  { %362 = vsyncpa [#allocation6], 1 }
 0x1b1   :  { %364 = vsyncpa [#allocation6 + $0x1], 1 }
 0x1b2   :  { %365 = vsyncpa [#allocation8], 1 }
 0x1b3   :  { %367 = vsyncpa [#allocation8 + $0x1], 1 }

</bundles_post_ra>
